<compile_context>
chip_gen: v7x
topology: tpu7x:2x2x1
jax: 0.10.0
libtpu: 0.0.40
codegen_flags: <defaults>
</compile_context>

<pallas_src>
import functools

import jax
import jax.numpy as jnp
from jax.experimental import pallas as pl
from jax.experimental.pallas import tpu as pltpu


def _round_up(x, m):
    return ((x + m - 1) // m) * m


# ----------------------------------------------------------------------------
# Pallas kernel: obs@W1o + act@W1a + b1 -> ReLU -> @W2 + b2 -> ReLU -> @W3 + b3
#                (+ obs residual when is_res_net)
# ----------------------------------------------------------------------------
def _mixture_mlp_kernel(net_id_ref,                       # scalar prefetch (SMEM)
                        obs_ref, act_ref,
                        w1o_ref, w1a_ref, b1_ref,
                        w2_ref, b2_ref,
                        w3_ref, b3_ref,
                        out_ref, *, is_res_net: bool, obs_dim: int):
    del net_id_ref  # network selection already happened in the weight index_maps

    obs = obs_ref[...]                                    # (TB, obs_dim) f32
    act = act_ref[...]                                    # (TB, act_dim) f32

    w1o = w1o_ref[0]                                      # (obs_dim, Hp) bf16
    w1a = w1a_ref[0]                                      # (act_dim, Hp) bf16
    h = (jnp.dot(obs.astype(w1o.dtype), w1o, preferred_element_type=jnp.float32)
         + jnp.dot(act.astype(w1a.dtype), w1a, preferred_element_type=jnp.float32)
         + b1_ref[0])                                     # bias in f32
    h = jnp.maximum(h, 0.0)                               # ReLU (activation_fn)

    w2 = w2_ref[0]                                        # (Hp, Hp) bf16
    h = jnp.dot(h.astype(w2.dtype), w2, preferred_element_type=jnp.float32) + b2_ref[0]
    h = jnp.maximum(h, 0.0)

    w3 = w3_ref[0]                                        # (Hp, Op) bf16
    y = jnp.dot(h.astype(w3.dtype), w3, preferred_element_type=jnp.float32) + b3_ref[0]

    out_ref[...] = y.astype(out_ref.dtype)                # lane-dense full store
    if is_res_net:
        # residual on the (unpadded) observation columns; small masked store
        out_ref[:, 0:obs_dim] = (y[:, 0:obs_dim] + obs).astype(out_ref.dtype)


def nn_mixture_forward(net_id, obs, action, stacked_params, *,
                       is_res_net: bool, batch_tile: int = 512):
    """Run the selected mixture member on (obs, action) in one fused kernel."""
    w1o, w1a, b1, w2, b2, w3, b3 = stacked_params
    B, obs_dim = obs.shape
    act_dim = action.shape[1]
    Hp = w2.shape[-1]                 # padded hidden width (multiple of 128)
    Op = w3.shape[-1]                 # padded output width (multiple of 128)

    TB = min(B, batch_tile)           # sized well under v7x's 32 MiB scoped VMEM
    grid = (pl.cdiv(B, TB),)

    def batch_map(i, net_ref):        # activations / output: tile over batch
        return (i, 0)

    def param_map(i, net_ref):        # weights: pick the selected net, stay resident
        return (net_ref[0], 0, 0)

    kernel = functools.partial(_mixture_mlp_kernel,
                               is_res_net=is_res_net, obs_dim=obs_dim)

    out_padded = pl.pallas_call(
        kernel,
        out_shape=jax.ShapeDtypeStruct((B, Op), jnp.float32),
        grid_spec=pltpu.PrefetchScalarGridSpec(
            num_scalar_prefetch=1,
            grid=grid,
            in_specs=[
                pl.BlockSpec((TB, obs_dim), batch_map),
                pl.BlockSpec((TB, act_dim), batch_map),
                pl.BlockSpec((1, obs_dim, Hp), param_map),
                pl.BlockSpec((1, act_dim, Hp), param_map),
                pl.BlockSpec((1, 1, Hp), param_map),
                pl.BlockSpec((1, Hp, Hp), param_map),
                pl.BlockSpec((1, 1, Hp), param_map),
                pl.BlockSpec((1, Hp, Op), param_map),
                pl.BlockSpec((1, 1, Op), param_map),
            ],
            out_specs=pl.BlockSpec((TB, Op), batch_map),
        ),
        compiler_params=pltpu.CompilerParams(
            dimension_semantics=("parallel",)),
    )(net_id, obs, action, w1o, w1a, b1, w2, b2, w3, b3)

    return out_padded[:, :obs_dim]    # slice off lane padding (glue)


# ----------------------------------------------------------------------------
# NNMixture glue: stack of networks, forward() picks assigns[-1]
# ----------------------------------------------------------------------------
class NNMixturePallas:
    """JAX/Pallas counterpart of NNMixture (forward path only)."""

    def __init__(self, obs_dim, act_dim, hidden, n_nets, *,
                 is_res_net=False, key=None, param_dtype=jnp.bfloat16):
        self.obs_dim, self.act_dim, self.hidden = obs_dim, act_dim, hidden
        self.is_res_net = is_res_net
        self.param_dtype = param_dtype
        self.assigns = []                 # same bookkeeping as the torch module
        self.networks = []                # logical (unpadded, f32) params per net
        key = jax.random.PRNGKey(0) if key is None else key
        d_in = obs_dim + act_dim
        for n in range(n_nets):
            ks = jax.random.split(jax.random.fold_in(key, n), 6)
            scale = 0.1
            self.networks.append((
                scale * jax.random.normal(ks[0], (d_in, hidden), jnp.float32),
                scale * jax.random.normal(ks[1], (1, hidden), jnp.float32),
                scale * jax.random.normal(ks[2], (hidden, hidden), jnp.float32),
                scale * jax.random.normal(ks[3], (1, hidden), jnp.float32),
                scale * jax.random.normal(ks[4], (hidden, obs_dim), jnp.float32),
                scale * jax.random.normal(ks[5], (1, obs_dim), jnp.float32),
            ))
        self.n_nets = n_nets
        self._stacked = self._stack_params()   # one-time param packing

    def _stack_params(self):
        """Stack all members into (n_nets, ...) arrays, split W1 into obs/act
        parts, and zero-pad feature dims to lane multiples (mathematically
        transparent: padded hidden units stay exactly 0 through the ReLUs)."""
        H, obs_dim = self.hidden, self.obs_dim
        Hp = _round_up(H, 128)
        Op = _round_up(obs_dim, 128)
        dt = self.param_dtype
        w1o, w1a, b1, w2, b2, w3, b3 = [], [], [], [], [], [], []
        for (W1, B1, W2, B2, W3, B3) in self.networks:
            w1o.append(jnp.pad(W1[:obs_dim, :], ((0, 0), (0, Hp - H))).astype(dt))
            w1a.append(jnp.pad(W1[obs_dim:, :], ((0, 0), (0, Hp - H))).astype(dt))
            b1.append(jnp.pad(B1, ((0, 0), (0, Hp - H))))
            w2.append(jnp.pad(W2, ((0, Hp - H), (0, Hp - H))).astype(dt))
            b2.append(jnp.pad(B2, ((0, 0), (0, Hp - H))))
            w3.append(jnp.pad(W3, ((0, Hp - H), (0, Op - obs_dim))).astype(dt))
            b3.append(jnp.pad(B3, ((0, 0), (0, Op - obs_dim))))
        return tuple(jnp.stack(x, axis=0) for x in (w1o, w1a, b1, w2, b2, w3, b3))

    def forward(self, obs, action):
        most_likely_net = self.assigns[-1]       # exactly as in the torch forward()
        net_id = jnp.asarray([most_likely_net], dtype=jnp.int32)
        return nn_mixture_forward(net_id, obs, action, self._stacked,
                                  is_res_net=self.is_res_net)

    # TODO(synk): fit / merge_nets / predict / log_likelihood involve Adam
    # training loops, wandb logging and data-dependent Python control flow —
    # host-side glue, not Pallas kernel work.


# ----------------------------------------------------------------------------
# Pure-JAX reference (uses the logical, unpadded params; same bf16 matmul math)
# ----------------------------------------------------------------------------
def _ref_forward(obs, action, params, *, is_res_net=False, param_dtype=jnp.bfloat16):
    w1, b1, w2, b2, w3, b3 = params
    x = jnp.concatenate([obs, action], axis=1)
    mm = lambda a, w: jnp.dot(a.astype(param_dtype), w.astype(param_dtype),
                              preferred_element_type=jnp.float32)
    h = jnp.maximum(mm(x, w1) + b1, 0.0)
    h = jnp.maximum(mm(h, w2) + b2, 0.0)
    y = mm(h, w3) + b3
    return y + obs if is_res_net else y


if __name__ == "__main__":
    B, OBS_DIM, ACT_DIM, HIDDEN, N_NETS = 8, 16, 8, 32, 3

    key = jax.random.PRNGKey(0)
    k_obs, k_act = jax.random.split(key)
    obs = jax.random.normal(k_obs, (B, OBS_DIM), jnp.float32)
    action = jax.random.normal(k_act, (B, ACT_DIM), jnp.float32)

    for is_res in (False, True):
        mixture = NNMixturePallas(OBS_DIM, ACT_DIM, HIDDEN, N_NETS,
                                  is_res_net=is_res, key=jax.random.PRNGKey(42))
        mixture.assigns = [0, 2, 1]              # forward() uses assigns[-1]

        out = jax.block_until_ready(mixture.forward(obs, action))
        ref = _ref_forward(obs, action, mixture.networks[mixture.assigns[-1]],
                           is_res_net=is_res)

        assert out.shape == (B, OBS_DIM)
        err = jnp.max(jnp.abs(out - ref))
        assert jnp.allclose(out, ref, atol=1e-4, rtol=1e-4), \
            f"mismatch (is_res_net={is_res}): max abs err {err}"

    print("KERNEL_OK")
</pallas_src>

<mosaic_0001>
module attributes {stable_mosaic.version = 11 : i64} {
  func.func @_mixture_mlp_kernel(%arg0: i32, %arg1: memref<1xi32, #tpu.memory_space<smem>>, %arg2: memref<8x16xf32, #tpu.memory_space<vmem>>, %arg3: memref<8x8xf32, #tpu.memory_space<vmem>>, %arg4: memref<1x16x128xbf16, #tpu.memory_space<vmem>>, %arg5: memref<1x8x128xbf16, #tpu.memory_space<vmem>>, %arg6: memref<1x1x128xf32, #tpu.memory_space<vmem>>, %arg7: memref<1x128x128xbf16, #tpu.memory_space<vmem>>, %arg8: memref<1x1x128xf32, #tpu.memory_space<vmem>>, %arg9: memref<1x128x128xbf16, #tpu.memory_space<vmem>>, %arg10: memref<1x1x128xf32, #tpu.memory_space<vmem>>, %arg11: memref<8x128xf32, #tpu.memory_space<vmem>>) attributes {dimension_semantics = [#tpu.dimension_semantics<parallel>], iteration_bounds = array<i64: 1>, scalar_prefetch = 1 : i64, scratch_operands = 0 : i64, tpu.core_type = #tpu.core_type<tc>, window_params = [{transform_indices = @transform_0, window_bounds = array<i64: 8, 16>}, {transform_indices = @transform_1, window_bounds = array<i64: 8, 8>}, {transform_indices = @transform_2, window_bounds = array<i64: 1, 16, 128>}, {transform_indices = @transform_3, window_bounds = array<i64: 1, 8, 128>}, {transform_indices = @transform_4, window_bounds = array<i64: 1, 1, 128>}, {transform_indices = @transform_5, window_bounds = array<i64: 1, 128, 128>}, {transform_indices = @transform_6, window_bounds = array<i64: 1, 1, 128>}, {transform_indices = @transform_7, window_bounds = array<i64: 1, 128, 128>}, {transform_indices = @transform_8, window_bounds = array<i64: 1, 1, 128>}, {transform_indices = @transform_9, window_bounds = array<i64: 8, 128>}]} {
    %c0 = arith.constant 0 : index
    %c0_0 = arith.constant 0 : index
    %0 = vector.load %arg2[%c0, %c0_0] : memref<8x16xf32, #tpu.memory_space<vmem>>, vector<8x16xf32>
    %c0_1 = arith.constant 0 : index
    %c0_2 = arith.constant 0 : index
    %1 = vector.load %arg3[%c0_1, %c0_2] : memref<8x8xf32, #tpu.memory_space<vmem>>, vector<8x8xf32>
    %c0_3 = arith.constant 0 : index
    %c0_4 = arith.constant 0 : index
    %c0_5 = arith.constant 0 : index
    %2 = vector.load %arg4[%c0_3, %c0_4, %c0_5] : memref<1x16x128xbf16, #tpu.memory_space<vmem>>, vector<1x16x128xbf16>
    %3 = vector.shape_cast %2 : vector<1x16x128xbf16> to vector<16x128xbf16>
    %c0_6 = arith.constant 0 : index
    %c0_7 = arith.constant 0 : index
    %c0_8 = arith.constant 0 : index
    %4 = vector.load %arg5[%c0_6, %c0_7, %c0_8] : memref<1x8x128xbf16, #tpu.memory_space<vmem>>, vector<1x8x128xbf16>
    %5 = vector.shape_cast %4 : vector<1x8x128xbf16> to vector<8x128xbf16>
    %6 = arith.truncf %0 : vector<8x16xf32> to vector<8x16xbf16>
    %cst = arith.constant dense<0.000000e+00> : vector<8x128xf32>
    %7 = tpu.matmul %6, %3, %cst {dimension_numbers = #tpu.dot_dimension_numbers<[1], [0], [0], [1], [0, 0, 1, 1], [], []>} : vector<8x16xbf16>, vector<16x128xbf16>, vector<8x128xf32> -> vector<8x128xf32>
    %8 = arith.truncf %1 : vector<8x8xf32> to vector<8x8xbf16>
    %cst_9 = arith.constant dense<0.000000e+00> : vector<8x128xf32>
    %9 = tpu.matmul %8, %5, %cst_9 {dimension_numbers = #tpu.dot_dimension_numbers<[1], [0], [0], [1], [0, 0, 1, 1], [], []>} : vector<8x8xbf16>, vector<8x128xbf16>, vector<8x128xf32> -> vector<8x128xf32>
    %10 = arith.addf %7, %9 : vector<8x128xf32>
    %c0_10 = arith.constant 0 : index
    %c0_11 = arith.constant 0 : index
    %c0_12 = arith.constant 0 : index
    %11 = vector.load %arg6[%c0_10, %c0_11, %c0_12] : memref<1x1x128xf32, #tpu.memory_space<vmem>>, vector<1x1x128xf32>
    %12 = vector.shape_cast %11 : vector<1x1x128xf32> to vector<1x128xf32>
    %13 = vector.broadcast %12 : vector<1x128xf32> to vector<8x128xf32>
    %14 = arith.addf %10, %13 : vector<8x128xf32>
    %cst_13 = arith.constant 0.000000e+00 : f32
    %15 = vector.broadcast %cst_13 : f32 to vector<8x128xf32>
    %16 = arith.maximumf %14, %15 : vector<8x128xf32>
    %c0_14 = arith.constant 0 : index
    %c0_15 = arith.constant 0 : index
    %c0_16 = arith.constant 0 : index
    %17 = vector.load %arg7[%c0_14, %c0_15, %c0_16] : memref<1x128x128xbf16, #tpu.memory_space<vmem>>, vector<1x128x128xbf16>
    %18 = vector.shape_cast %17 : vector<1x128x128xbf16> to vector<128x128xbf16>
    %19 = arith.truncf %16 : vector<8x128xf32> to vector<8x128xbf16>
    %cst_17 = arith.constant dense<0.000000e+00> : vector<8x128xf32>
    %20 = tpu.matmul %19, %18, %cst_17 {dimension_numbers = #tpu.dot_dimension_numbers<[1], [0], [0], [1], [0, 0, 1, 1], [], []>} : vector<8x128xbf16>, vector<128x128xbf16>, vector<8x128xf32> -> vector<8x128xf32>
    %c0_18 = arith.constant 0 : index
    %c0_19 = arith.constant 0 : index
    %c0_20 = arith.constant 0 : index
    %21 = vector.load %arg8[%c0_18, %c0_19, %c0_20] : memref<1x1x128xf32, #tpu.memory_space<vmem>>, vector<1x1x128xf32>
    %22 = vector.shape_cast %21 : vector<1x1x128xf32> to vector<1x128xf32>
    %23 = vector.broadcast %22 : vector<1x128xf32> to vector<8x128xf32>
    %24 = arith.addf %20, %23 : vector<8x128xf32>
    %cst_21 = arith.constant 0.000000e+00 : f32
    %25 = vector.broadcast %cst_21 : f32 to vector<8x128xf32>
    %26 = arith.maximumf %24, %25 : vector<8x128xf32>
    %c0_22 = arith.constant 0 : index
    %c0_23 = arith.constant 0 : index
    %c0_24 = arith.constant 0 : index
    %27 = vector.load %arg9[%c0_22, %c0_23, %c0_24] : memref<1x128x128xbf16, #tpu.memory_space<vmem>>, vector<1x128x128xbf16>
    %28 = vector.shape_cast %27 : vector<1x128x128xbf16> to vector<128x128xbf16>
    %29 = arith.truncf %26 : vector<8x128xf32> to vector<8x128xbf16>
    %cst_25 = arith.constant dense<0.000000e+00> : vector<8x128xf32>
    %30 = tpu.matmul %29, %28, %cst_25 {dimension_numbers = #tpu.dot_dimension_numbers<[1], [0], [0], [1], [0, 0, 1, 1], [], []>} : vector<8x128xbf16>, vector<128x128xbf16>, vector<8x128xf32> -> vector<8x128xf32>
    %c0_26 = arith.constant 0 : index
    %c0_27 = arith.constant 0 : index
    %c0_28 = arith.constant 0 : index
    %31 = vector.load %arg10[%c0_26, %c0_27, %c0_28] : memref<1x1x128xf32, #tpu.memory_space<vmem>>, vector<1x1x128xf32>
    %32 = vector.shape_cast %31 : vector<1x1x128xf32> to vector<1x128xf32>
    %33 = vector.broadcast %32 : vector<1x128xf32> to vector<8x128xf32>
    %34 = arith.addf %30, %33 : vector<8x128xf32>
    %c0_29 = arith.constant 0 : index
    %c0_30 = arith.constant 0 : index
    %35 = vector.load %arg11[%c0_29, %c0_30] : memref<8x128xf32, #tpu.memory_space<vmem>>, vector<8x128xf32>
    tpu.vector_store %arg11[%c0_29, %c0_30], %34 {strides = array<i32>} : memref<8x128xf32, #tpu.memory_space<vmem>>, vector<8x128xf32>,
    return
  }
  func.func @transform_0(%arg0: i32, %arg1: memref<1xi32, #tpu.memory_space<smem>>) -> (i32, i32) {
    %c0_i32 = arith.constant 0 : i32
    %c0_i32_0 = arith.constant 0 : i32
    return %arg0, %c0_i32 : i32, i32
  }
  func.func @transform_1(%arg0: i32, %arg1: memref<1xi32, #tpu.memory_space<smem>>) -> (i32, i32) {
    %c0_i32 = arith.constant 0 : i32
    %c0_i32_0 = arith.constant 0 : i32
    return %arg0, %c0_i32 : i32, i32
  }
  func.func @transform_2(%arg0: i32, %arg1: memref<1xi32, #tpu.memory_space<smem>>) -> (i32, i32, i32) {
    %c0 = arith.constant 0 : index
    %0 = memref.load %arg1[%c0] : memref<1xi32, #tpu.memory_space<smem>>
    %c0_i32 = arith.constant 0 : i32
    %c0_i32_0 = arith.constant 0 : i32
    %c0_i32_1 = arith.constant 0 : i32
    return %0, %c0_i32, %c0_i32_0 : i32, i32, i32
  }
  func.func @transform_3(%arg0: i32, %arg1: memref<1xi32, #tpu.memory_space<smem>>) -> (i32, i32, i32) {
    %c0 = arith.constant 0 : index
    %0 = memref.load %arg1[%c0] : memref<1xi32, #tpu.memory_space<smem>>
    %c0_i32 = arith.constant 0 : i32
    %c0_i32_0 = arith.constant 0 : i32
    %c0_i32_1 = arith.constant 0 : i32
    return %0, %c0_i32, %c0_i32_0 : i32, i32, i32
  }
  func.func @transform_4(%arg0: i32, %arg1: memref<1xi32, #tpu.memory_space<smem>>) -> (i32, i32, i32) {
    %c0 = arith.constant 0 : index
    %0 = memref.load %arg1[%c0] : memref<1xi32, #tpu.memory_space<smem>>
    %c0_i32 = arith.constant 0 : i32
    %c0_i32_0 = arith.constant 0 : i32
    %c0_i32_1 = arith.constant 0 : i32
    return %0, %c0_i32, %c0_i32_0 : i32, i32, i32
  }
  func.func @transform_5(%arg0: i32, %arg1: memref<1xi32, #tpu.memory_space<smem>>) -> (i32, i32, i32) {
    %c0 = arith.constant 0 : index
    %0 = memref.load %arg1[%c0] : memref<1xi32, #tpu.memory_space<smem>>
    %c0_i32 = arith.constant 0 : i32
    %c0_i32_0 = arith.constant 0 : i32
    %c0_i32_1 = arith.constant 0 : i32
    return %0, %c0_i32, %c0_i32_0 : i32, i32, i32
  }
  func.func @transform_6(%arg0: i32, %arg1: memref<1xi32, #tpu.memory_space<smem>>) -> (i32, i32, i32) {
    %c0 = arith.constant 0 : index
    %0 = memref.load %arg1[%c0] : memref<1xi32, #tpu.memory_space<smem>>
    %c0_i32 = arith.constant 0 : i32
    %c0_i32_0 = arith.constant 0 : i32
    %c0_i32_1 = arith.constant 0 : i32
    return %0, %c0_i32, %c0_i32_0 : i32, i32, i32
  }
  func.func @transform_7(%arg0: i32, %arg1: memref<1xi32, #tpu.memory_space<smem>>) -> (i32, i32, i32) {
    %c0 = arith.constant 0 : index
    %0 = memref.load %arg1[%c0] : memref<1xi32, #tpu.memory_space<smem>>
    %c0_i32 = arith.constant 0 : i32
    %c0_i32_0 = arith.constant 0 : i32
    %c0_i32_1 = arith.constant 0 : i32
    return %0, %c0_i32, %c0_i32_0 : i32, i32, i32
  }
  func.func @transform_8(%arg0: i32, %arg1: memref<1xi32, #tpu.memory_space<smem>>) -> (i32, i32, i32) {
    %c0 = arith.constant 0 : index
    %0 = memref.load %arg1[%c0] : memref<1xi32, #tpu.memory_space<smem>>
    %c0_i32 = arith.constant 0 : i32
    %c0_i32_0 = arith.constant 0 : i32
    %c0_i32_1 = arith.constant 0 : i32
    return %0, %c0_i32, %c0_i32_0 : i32, i32, i32
  }
  func.func @transform_9(%arg0: i32, %arg1: memref<1xi32, #tpu.memory_space<smem>>) -> (i32, i32) {
    %c0_i32 = arith.constant 0 : i32
    %c0_i32_0 = arith.constant 0 : i32
    return %arg0, %c0_i32 : i32, i32
  }
}

</mosaic_0001>

<bundles_post_ra>
// kernel: tpu_custom_call.1
= control target key start
LH: loop header
LB: loop body
LE: loop exit
PB: predicated region body
PF: predicated region fallthrough
CT: control target
= control target key end

     0   :  { %16 = vsyncpa [#allocation5], 0  ;;  %s1045_s0 = inlined_call_operand.<no memory space> [shape: s32[1], index: 0, kind: input, shape index: {}]   ;;  %s1046_s1 = inlined_call_operand.hbm [shape: f32[8,16], index: 1, kind: input, shape index: {}]   ;;  %s1047_s2 = inlined_call_operand.hbm [shape: f32[8,8], index: 2, kind: input, shape index: {}]   ;;  %s1048_s3 = inlined_call_operand.hbm [shape: bf16[3,16,128], index: 3, kind: input, shape index: {}]   ;;  %s1049_s4 = inlined_call_operand.vmem [shape: bf16[3,8,128], index: 4, kind: input, shape index: {}]   ;;  %s1050_s5 = inlined_call_operand.vmem [shape: f32[3,1,128], index: 5, kind: input, shape index: {}]   ;;  %s1051_s6 = inlined_call_operand.hbm [shape: bf16[3,128,128], index: 6, kind: input, shape index: {}]   ;;  %s1052_s7 = inlined_call_operand.vmem [shape: f32[3,1,128], index: 7, kind: input, shape index: {}]   ;;  %s1053_s8 = inlined_call_operand.hbm [shape: bf16[3,128,128], index: 8, kind: input, shape index: {}]   ;;  %s1054_s9 = inlined_call_operand.vmem [shape: f32[3,1,128], index: 9, kind: input, shape index: {}]   ;;  %s1055_s10 = inlined_call_operand.hbm [shape: f32[8,128], index: 10, kind: output, shape index: {}]  }
   0x1   :  { %17 = vsyncpa [#allocation8], 0 }
   0x2   :  { %18 = vsyncpa [#allocation11], 0 }
   0x3   :  { %19 = vsyncpa [#allocation6], 0  ;;  %s831_s13 = smov [#allocation7]   ;;  %s582_s17 = sshll.u32 %s1045_s0, 10 }
   0x4   :  { %s36_s14 = sshll.u32 %s831_s13, 4  ;;  %s685_s20 = scalar_lea.hbm %s1047_s2, 128  ;;  %s37_s14 = int_to_ptr.vmem [resolvable:$true] %s36_s14 }
   0x5   :  { %p686_p0 = scmp.ne.s32.totalorder %s1047_s2, %s685_s20  ;;  %p689_p1 = scmp.lt.u32.totalorder %s685_s20, %s1047_s2 }
   0x7   :  { %p691_p2 = pnand %p689_p1, %p686_p0 }
   0x9   :  { %694 = shalt.err (!%p691_p2)
}
   0xa   :  { %s695_s25 = scalar_lea.vmem %s37_s14, 128  ;;  %p700_p4 = scmp.lt.s32.totalorder %s37_s14, %s37_s14 }
   0xb   :  { %p696_p3 = scmp.ne.s32.totalorder %s37_s14, %s695_s25  ;;  %p701_p5 = scmp.lt.s32.totalorder %s695_s25, %s695_s25 }
   0xd   :  { %p702_p6 = por %p701_p5, %p700_p4 }
   0xf   :  { %p703_p7 = pnand %p702_p6, %p696_p3 }
  0x11   :  { %706 = shalt.err (!%p703_p7)
}
  0x12   :  { %39 = dma.hbm_to_vmem [thread:$0]  %s1047_s2, 128, %s37_s14, [#allocation8]  }
  0x13   :  { %s79_s30 = scalar_lea.hbm %s1051_s6, %s582_s17  ;;  %s832_s11 = smov [#allocation10]  }
  0x14   :  { %s80_s12 = sshll.u32 %s832_s11, 4  ;;  %s917_s16 = scalar_lea.hbm %s1053_s8, %s582_s17  ;;  %s81_s12 = int_to_ptr.vmem [resolvable:$true] %s80_s12 }
  0x15   :  { %s707_s18 = scalar_lea.hbm %s79_s30, 1024  ;;  %s709_s21 = scalar_lea.hbm %s1051_s6, 3072 }
  0x16   :  { %p708_p8 = scmp.ne.s32.totalorder %s79_s30, %s707_s18  ;;  %p710_p9 = scmp.lt.u32.totalorder %s79_s30, %s1051_s6 }
  0x17   :  { %p711_p10 = scmp.lt.u32.totalorder %s709_s21, %s707_s18  ;;  %p713_p12 = scmp.lt.u32.totalorder %s707_s18, %s79_s30 }
  0x19   :  { %p712_p11 = por %p711_p10, %p710_p9 }
  0x1b   :  { %p714_p13 = por %p713_p12, %p712_p11 }
  0x1d   :  { %p715_p0 = pnand %p714_p13, %p708_p8 }
  0x1f   :  { %718 = shalt.err (!%p715_p0)
}
  0x20   :  { %s719_s14 = scalar_lea.vmem %s81_s12, 1024  ;;  %p724_p2 = scmp.lt.s32.totalorder %s81_s12, %s81_s12 }
  0x21   :  { %p720_p1 = scmp.ne.s32.totalorder %s81_s12, %s719_s14  ;;  %p725_p3 = scmp.lt.s32.totalorder %s719_s14, %s719_s14 }
  0x23   :  { %p726_p4 = por %p725_p3, %p724_p2 }
  0x25   :  { %p727_p5 = pnand %p726_p4, %p720_p1 }
  0x27   :  { %730 = shalt.err (!%p727_p5)
}
  0x28   :  { %s833_s17 = smov 64   ;;  %s834_s23 = smov 4  }
  0x29   :  { %86 = dma.hbm_to_vmem [thread:$0]  %s79_s30, 1024, %s81_s12, [#allocation11], %s833_s17, %s833_s17, %s834_s23  }
  0x2a   :  { %s835_s6 = smov [#allocation4]   ;;  %s581_s27 = sshll.u32 %s1045_s0, 7 }
  0x2b   :  { %s26_s24 = sshll.u32 %s835_s6, 4  ;;  %s934_s11 = scalar_lea.hbm %s1048_s3, %s581_s27  ;;  %s27_s24 = int_to_ptr.vmem [resolvable:$true] %s26_s24 }
  0x2c   :  { %s731_s18 = scalar_lea.hbm %s1046_s1, 128 }
  0x2d   :  { %p732_p6 = scmp.ne.s32.totalorder %s1046_s1, %s731_s18  ;;  %p735_p7 = scmp.lt.u32.totalorder %s731_s18, %s1046_s1 }
  0x2f   :  { %p737_p8 = pnand %p735_p7, %p732_p6 }
  0x31   :  { %740 = shalt.err (!%p737_p8)
}
  0x32   :  { %s741_s21 = scalar_lea.vmem %s27_s24, 128  ;;  %p746_p10 = scmp.lt.s32.totalorder %s27_s24, %s27_s24 }
  0x33   :  { %p742_p9 = scmp.ne.s32.totalorder %s27_s24, %s741_s21  ;;  %p747_p11 = scmp.lt.s32.totalorder %s741_s21, %s741_s21 }
  0x35   :  { %p748_p12 = por %p747_p11, %p746_p10 }
  0x37   :  { %p749_p13 = pnand %p748_p12, %p742_p9 }
  0x39   :  { %752 = shalt.err (!%p749_p13)
}
  0x3a   :  { %29 = dma.hbm_to_vmem [thread:$0]  %s1046_s1, 128, %s27_s24, [#allocation5]  }
  0x3b   :  { %s836_s14 = smov [#allocation9]   ;;  %s837_s25 = smov [#allocation12]  }
  0x3c   :  { %s49_s6 = sshll.u32 %s836_s14, 4  ;;  %s103_s26 = sshll.u32 %s837_s25, 4  ;;  %s50_s6 = int_to_ptr.vmem [resolvable:$true] %s49_s6  ;;  %s948_s26 = int_to_ptr.vmem [resolvable:$true] %s103_s26 }
  0x3d   :  { %s753_s27 = scalar_lea.hbm %s934_s11, 128  ;;  %s755_s13 = scalar_lea.hbm %s1048_s3, 384 }
  0x3e   :  { %p754_p0 = scmp.ne.s32.totalorder %s934_s11, %s753_s27  ;;  %p756_p1 = scmp.lt.u32.totalorder %s934_s11, %s1048_s3 }
  0x3f   :  { %p757_p2 = scmp.lt.u32.totalorder %s755_s13, %s753_s27  ;;  %p759_p4 = scmp.lt.u32.totalorder %s753_s27, %s934_s11 }
  0x41   :  { %p758_p3 = por %p757_p2, %p756_p1 }
  0x43   :  { %p760_p5 = por %p759_p4, %p758_p3 }
  0x45   :  { %p761_p6 = pnand %p760_p5, %p754_p0 }
  0x47   :  { %764 = shalt.err (!%p761_p6)
}
  0x48   :  { %s765_s1 = scalar_lea.vmem %s50_s6, 128  ;;  %p770_p8 = scmp.lt.s32.totalorder %s50_s6, %s50_s6 }
  0x49   :  { %p766_p7 = scmp.ne.s32.totalorder %s50_s6, %s765_s1  ;;  %p771_p9 = scmp.lt.s32.totalorder %s765_s1, %s765_s1 }
  0x4b   :  { %p772_p10 = por %p771_p9, %p770_p8 }
  0x4d   :  { %p773_p11 = pnand %p772_p10, %p766_p7 }
  0x4f   :  { %776 = shalt.err (!%p773_p11)
}
  0x50   :  { %55 = dma.hbm_to_vmem [thread:$0]  %s934_s11, 128, %s50_s6, [#allocation8], %s833_s17, %s833_s17, %s834_s23  }
  0x51   :  { %s777_s3 = scalar_lea.hbm %s917_s16, 1024  ;;  %s779_s20 = scalar_lea.hbm %s1053_s8, 3072 }
  0x52   :  { %p778_p12 = scmp.ne.s32.totalorder %s917_s16, %s777_s3  ;;  %p780_p13 = scmp.lt.u32.totalorder %s917_s16, %s1053_s8 }
  0x53   :  { %p781_p0 = scmp.lt.u32.totalorder %s779_s20, %s777_s3  ;;  %p783_p2 = scmp.lt.u32.totalorder %s777_s3, %s917_s16 }
  0x55   :  { %p782_p1 = por %p781_p0, %p780_p13 }
  0x57   :  { %p784_p3 = por %p783_p2, %p782_p1 }
  0x59   :  { %p785_p4 = pnand %p784_p3, %p778_p12 }
  0x5b   :  { %788 = shalt.err (!%p785_p4)
}
  0x5c   :  { %s789_s11 = scalar_lea.vmem %s948_s26, 1024  ;;  %p794_p6 = scmp.lt.s32.totalorder %s948_s26, %s948_s26 }
  0x5d   :  { %p790_p5 = scmp.ne.s32.totalorder %s948_s26, %s789_s11  ;;  %p795_p7 = scmp.lt.s32.totalorder %s789_s11, %s789_s11 }
  0x5f   :  { %p796_p8 = por %p795_p7, %p794_p6 }
  0x61   :  { %p797_p9 = pnand %p796_p8, %p790_p5 }
  0x63   :  { %800 = shalt.err (!%p797_p9)
}
  0x64   :  { %109 = dma.hbm_to_vmem [thread:$0]  %s917_s16, 1024, %s948_s26, [#allocation11], %s833_s17, %s833_s17, %s834_s23  }
  0x65   :  { %823 = dma.done.wait [#allocation5], 128  }
  0x66   :  { %824 = vsyncadd [#allocation5], 4294967168 }
  0x67   :  { %825 = dma.done.wait [#allocation8], 256  }
  0x68   :  { %826 = vsyncadd [#allocation8], 4294967040 }
  0x69   :  { %827 = dma.done.wait [#allocation11], 2048  }
  0x6a   :  { %828 = vsyncadd [#allocation11], 4294965248  ;;  %p151_p10 = scmp.lt.s32.totalorder %s1045_s0, 2  ;;  %v838_v0 = vmov 0.0   ;;  %vm839_vm0 = vmmov 0   ;;  %vm185_vm1 = vcmask 1043456  }
  0x6b   :  { %606 = vmatprep.subr.bf16.mxu0 %v838_v0  ;;  %612 = vmatprep.subr.bf16.mxu1 %v838_v0  ;;  %v668_v3 = vld [vmem:[#allocation9] sm:$0xff]   ;;  %v175_v4 = vld [vmem:[#allocation7] sm:$0xff]  ;;  %v174_v5 = vld [vmem:[#allocation4] sm:$0xff]  ;;  %vm181_vm2 = vcmask 64512   ;;  %vm235_vm3 = vcmask 130048   ;;  %s840_s15 = smov [#allocation13]  }
  0x6c   :  { %s1057_s0 = smov (!%p151_p10, %s1045_s0), 2  ;;  %608 = vmatprep.mubr.msk.bf16.mxu0 %vm839_vm0, %v838_v0  ;;  %614 = vmatprep.mubr.msk.bf16.mxu1 %vm839_vm0, %v838_v0  ;;  %v180_v6 = vpack.c.bf16 %v175_v4, %v175_v4  ;;  %v179_v7 = vpack.c.bf16 %v174_v5, %v174_v5  ;;  %v669_v8 = vld [vmem:[#allocation10] sm:$0xff]   ;;  %v670_v9 = vld [vmem:[#allocation10 + $0x8] sm:$0xff]   ;;  %v671_v10 = vld [vmem:[#allocation10 + $0x10] sm:$0xff]   ;;  %s520_s18 = sshll.u32 %s840_s15, 4  ;;  %s521_s18 = int_to_ptr.vmem [resolvable:$true] %s520_s18 }
  0x6d   :  { %s558_s16 = sshll.u32 %s1057_s0, 2  ;;  %613 = vmatpush3.bf16.msra.mxu1 %v668_v3  ;;  %v672_v11 = vld [vmem:[#allocation10 + $0x18] sm:$0xff]   ;;  %v673_v12 = vld [vmem:[#allocation10 + $0x20] sm:$0xff]   ;;  %v674_v13 = vld [vmem:[#allocation10 + $0x28] sm:$0xff]   ;;  %s159_s25 = scalar_lea.vmem %s1050_s5, %s1057_s0 }
  0x6e   :  { %s154_s14 = scalar_lea.vmem %s1049_s4, %s558_s16  ;;  %638 = vmatprep.subr.bf16.mxu1 %v838_v0  ;;  %v675_v14 = vld [vmem:[#allocation10 + $0x30] sm:$0xff]   ;;  %v676_v15 = vld [vmem:[#allocation10 + $0x38] sm:$0xff]   ;;  %v677_v16 = vld [vmem:[#allocation12] sm:$0xff]   ;;  %s165_s27 = scalar_lea.vmem %s1052_s7, %s1057_s0 }
  0x6f   :  { %v178_v1 = vld [vmem:[%s154_s14] sm:$0xf]  ;;  %v679_v18 = vld [vmem:[#allocation12 + $0x10] sm:$0xff]   ;;  %v680_v19 = vld [vmem:[#allocation12 + $0x18] sm:$0xff]   ;;  %s171_s13 = scalar_lea.vmem %s1054_s9, %s1057_s0  ;;  %s801_s7 = scalar_lea.vmem %s521_s18, 128 }
  0x70   :  { %v187_v2 = vsel %vm185_vm1, %v178_v1, 0  ;;  %615 = vmatmul.mubr.msk.bf16.vlgmr.msra.gmra.mrb[0].mxu1 %vm235_vm3, %v179_v7  ;;  %v678_v17 = vld [vmem:[#allocation12 + $0x8] sm:$0xff]   ;;  %v681_v20 = vld [vmem:[#allocation12 + $0x20] sm:$0xff]   ;;  %v683_v35 = vld [vmem:[#allocation12 + $0x30] sm:$0xff]   ;;  %p802_p11 = scmp.ne.s32.totalorder %s521_s18, %s801_s7  ;;  %p806_p12 = scmp.lt.s32.totalorder %s521_s18, %s521_s18 }
  0x71   :  { %607 = vmatpush3.bf16.msra.mxu0 %v187_v2  ;;  %654 = vmatprep.mubr.msk.bf16.mxu1 %vm839_vm0, %v838_v0  ;;  %v682_v21 = vld [vmem:[#allocation12 + $0x28] sm:$0xff]   ;;  %v684_v36 = vld [vmem:[#allocation12 + $0x38] sm:$0xff]   ;;  %p807_p13 = scmp.lt.s32.totalorder %s801_s7, %s801_s7 }
  0x72   :  { %618 = vmatprep.subr.bf16.mxu0 %v838_v0  ;;  %639 = vmatpush3.bf16.msra.mxu1 %v677_v16  ;;  %v562_v25 = vld [vmem:[%s159_s25] ss:$0 sm:$0xff] }
  0x73   :  { %640 = vmatprep.subr.bf16.mxu1 %v838_v0  ;;  %v563_v37 = vld [vmem:[%s165_s27] ss:$0 sm:$0xff]  ;;  %p808_p0 = por %p807_p13, %p806_p12 }
  0x74   :  { %609 = vmatmul.mubr.msk.bf16.vlgmr.msra.gmra.mrb[0].mxu0 %vm181_vm2, %v180_v6  ;;  %v572_v45 = vld [vmem:[%s171_s13] ss:$0 sm:$0xff] }
  0x75   :  { %619 = vmatpush3.bf16.msra.mxu0 %v669_v8  ;;  %634 = vmatprep.mubr.msk.bf16.mxu0 %vm839_vm0, %v838_v0  ;;  %p809_p1 = pnand %p808_p0, %p802_p11 }
  0x76   :  { %620 = vmatprep.subr.bf16.mxu0 %v838_v0  ;;  %641 = vmatpush3.bf16.msra.mxu1 %v678_v17 }
  0x77   :  { %642 = vmatprep.subr.bf16.mxu1 %v838_v0 }
  0x79   :  { %621 = vmatpush3.bf16.msra.mxu0 %v670_v9 }
  0x7a   :  { %622 = vmatprep.subr.bf16.mxu0 %v838_v0  ;;  %643 = vmatpush3.bf16.msra.mxu1 %v679_v18 }
  0x7b   :  { %644 = vmatprep.subr.bf16.mxu1 %v838_v0 }
  0x7d   :  { %623 = vmatpush3.bf16.msra.mxu0 %v671_v10 }
  0x7e   :  { %624 = vmatprep.subr.bf16.mxu0 %v838_v0  ;;  %645 = vmatpush3.bf16.msra.mxu1 %v680_v19 }
  0x7f   :  { %646 = vmatprep.subr.bf16.mxu1 %v838_v0 }
  0x81   :  { %625 = vmatpush3.bf16.msra.mxu0 %v672_v11 }
  0x82   :  { %626 = vmatprep.subr.bf16.mxu0 %v838_v0  ;;  %647 = vmatpush3.bf16.msra.mxu1 %v681_v20 }
  0x83   :  { %648 = vmatprep.subr.bf16.mxu1 %v838_v0 }
  0x85   :  { %627 = vmatpush3.bf16.msra.mxu0 %v673_v12 }
  0x86   :  { %628 = vmatprep.subr.bf16.mxu0 %v838_v0  ;;  %649 = vmatpush3.bf16.msra.mxu1 %v682_v21 }
  0x87   :  { %650 = vmatprep.subr.bf16.mxu1 %v838_v0 }
  0x89   :  { %629 = vmatpush3.bf16.msra.mxu0 %v674_v13 }
  0x8a   :  { %630 = vmatprep.subr.bf16.mxu0 %v838_v0  ;;  %651 = vmatpush3.bf16.msra.mxu1 %v683_v35 }
  0x8b   :  { %652 = vmatprep.subr.bf16.mxu1 %v838_v0 }
  0x8d   :  { %631 = vmatpush3.bf16.msra.mxu0 %v675_v14 }
  0x8e   :  { %632 = vmatprep.subr.bf16.mxu0 %v838_v0  ;;  %653 = vmatpush3.bf16.msra.mxu1 %v684_v36 }
  0x91   :  { %633 = vmatpush3.bf16.msra.mxu0 %v676_v15 }
 0x143   :  { %v273_v24 = vpop.f32.mrb[0].mxu1 }
 0x144   :  { %v616_v28 = vpop.f32.mrb[1].mxu1 }
 0x145   :  { %v276_v30 = vpop.f32.mrb[2].mxu1 }
 0x146   :  { %v617_v32 = vpop.f32.mrb[3].mxu1 }
 0x147   :  { %v223_v22 = vpop.f32.mrb[0].mxu0 }
 0x148   :  { %v610_v23 = vpop.f32.mrb[1].mxu0  ;;  %v274_v26 = vadd.f32 %v273_v24, %v223_v22 }
 0x149   :  { %v226_v27 = vpop.f32.mrb[2].mxu0 }
 0x14a   :  { %v611_v29 = vpop.f32.mrb[3].mxu0  ;;  %v286_v31 = vadd.f32 %v562_v25, %v274_v26 }
 0x14c   :  { %v287_v33 = vmax.f32 %v286_v31, 0.0 }
 0x14e   :  { %v304_v34 = vpack.c.bf16 %v287_v33, %v287_v33 }
 0x150   :  { %635 = vmatmul.mubr.bf16.vlgmr.msra.gmra.mrb[4].mxu0 %v304_v34 }
 0x223   :  { %v394_v38 = vpop.f32.mrb[4].mxu0 }
 0x224   :  { %v395_v39 = vadd.f32 %v563_v37, %v394_v38  ;;  %v636_v40 = vpop.f32.mrb[5].mxu0 }
 0x225   :  { %v397_v41 = vpop.f32.mrb[6].mxu0 }
 0x226   :  { %v400_v42 = vmax.f32 %v395_v39, 0.0  ;;  %v637_v43 = vpop.f32.mrb[7].mxu0 }
 0x228   :  { %v417_v44 = vpack.c.bf16 %v400_v42, %v400_v42 }
 0x22a   :  { %655 = vmatmul.mubr.bf16.vlgmr.msra.gmra.mrb[4].mxu1 %v417_v44 }
 0x2fd   :  { %v507_v46 = vpop.f32.mrb[4].mxu1 }
 0x2fe   :  { %v508_v47 = vadd.f32 %v572_v45, %v507_v46  ;;  %v656_v48 = vpop.f32.mrb[5].mxu1 }
 0x2ff   :  { %v510_v49 = vpop.f32.mrb[6].mxu1 }
 0x300   :  { %513 = vst [vmem:[#allocation13] sm:$0xff] %v508_v47  ;;  %v657_v50 = vpop.f32.mrb[7].mxu1 }
 0x301   :  { %812 = shalt.err (!%p809_p1)
}
 0x302   :  { %s813_s0 = scalar_lea.hbm %s1055_s10, 128 }
 0x303   :  { %p814_p2 = scmp.ne.s32.totalorder %s1055_s10, %s813_s0  ;;  %p817_p3 = scmp.lt.u32.totalorder %s813_s0, %s1055_s10 }
 0x305   :  { %p819_p4 = pnand %p817_p3, %p814_p2 }
 0x307   :  { %822 = shalt.err (!%p819_p4)
}
 0x308   :  { %523 = dma.vmem_to_hbm [thread:$0]  %s521_s18, 128, %s1055_s10, [#allocation6]  }
 0x309   :  { %829 = dma.done.wait [#allocation6], 128  }
 0x30a   :  { %830 = vsyncadd [#allocation6], 4294967168 }
 0x30b   :  { %527 = vsyncpa [#allocation5], 1 }
 0x30c   :  { %528 = vsyncpa [#allocation8], 1 }
 0x30d   :  { %529 = vsyncpa [#allocation11], 1 }
 0x30e   :  { %530 = vsyncpa [#allocation6], 1 }

</bundles_post_ra>
